<compile_context>
chip_gen: v6e
topology: v6e:2x2x1
jax: 0.10.0
libtpu: 0.0.40
codegen_flags: <defaults>
</compile_context>

<pallas_src>
import functools

import jax
import jax.numpy as jnp
import numpy as np
from jax.experimental import pallas as pl
from jax.experimental.pallas import tpu as pltpu


def _contrastive_loss_kernel(o1_ref, o2_ref, lab_ref, out_ref, acc_ref,
                             *, margin, eps, batch, tile_b, tiles_per_core):
    t = pl.program_id(1)

    @pl.when(t == 0)
    def _init():
        acc_ref[...] = jnp.zeros_like(acc_ref)

    o1 = o1_ref[...].astype(jnp.float32)
    o2 = o2_ref[...].astype(jnp.float32)
    lab = lab_ref[...].astype(jnp.float32)

    # Valid-row mask: rows past the true batch (tail of a partial tile, padded
    # rows, or a fully out-of-range clamped tile) contribute exactly zero.
    tile_idx = pl.program_id(0) * tiles_per_core + t
    row_start = tile_idx * tile_b
    row_ids = jax.lax.broadcasted_iota(jnp.int32, (tile_b, 1), 0)
    valid = (row_start + row_ids) < batch

    # torch.nn.functional.pairwise_distance(p=2, eps=1e-6, keepdim=True)
    diff = o1 - o2 + eps
    dist_sq = jnp.sum(diff * diff, axis=-1, keepdims=True)        # (tile_b, 1)
    dist = jnp.sqrt(dist_sq)
    hinge = jnp.maximum(margin - dist, 0.0)                       # clamp(margin-d, 0)
    term = (1.0 - lab) * dist_sq + lab * (hinge * hinge)
    term = jnp.where(valid, term, 0.0)

    acc_ref[...] += jnp.sum(term, keepdims=True)                  # (1, 1) partial sum

    @pl.when(t == pl.num_programs(1) - 1)
    def _finalize():
        out_ref[0] = acc_ref[...]                                 # per-core partial


def _vmem_capacity_bytes(default=64 * 1024 * 1024):
    """Generation-aware VMEM capacity; conservative 64 MiB fallback (v7x-safe)."""
    try:
        info = pltpu.get_tpu_info()
        for name in ("vmem_capacity_bytes", "vmem_bytes", "vmem_size_bytes"):
            v = getattr(info, name, None)
            if v:
                return int(v)
    except Exception:
        pass
    return default


def _pick_tile_b(batch_padded, feat, itemsize, vmem_cap):
    """Largest multiple-of-8 tile whose full double-buffered streaming footprint
    (2 embedding inputs x 2 buffers + lane-padded label buffers + f32 working
    set) stays within ~40% of this generation's VMEM."""
    budget = int(vmem_cap * 0.4)
    per_row = (2 * 2 * feat * itemsize      # two embedding streams, double-buffered
               + 2 * 128 * 4                # (tile_b,1) label lane-pads to 128 f32 lanes
               + 2 * feat * 4)              # f32 intermediates (diff, casts) headroom
    tile_b = (budget // per_row) // 8 * 8
    return max(8, min(tile_b, batch_padded))


def contrastive_loss_pallas(output1, output2, label, margin=2.0, eps=1e-6,
                            max_tile_b=None):
    """Pallas TPU equivalent of ContrastiveLoss(margin).forward(o1, o2, label).

    Inputs may be f32 or bf16; math is done in f32 on-chip."""
    assert output1.shape == output2.shape and output1.ndim == 2
    B, D = output1.shape
    label = jnp.reshape(label, (B, 1)).astype(jnp.float32)

    # Pad the batch to a multiple of 8 only when needed (sublane alignment);
    # padded rows are masked out inside the kernel.
    B_pad = ((B + 7) // 8) * 8
    if B_pad != B:
        pad = ((0, B_pad - B), (0, 0))
        output1 = jnp.pad(output1, pad)
        output2 = jnp.pad(output2, pad)
        label = jnp.pad(label, pad)

    itemsize = jnp.dtype(output1.dtype).itemsize
    vmem_cap = _vmem_capacity_bytes()
    tile_b = _pick_tile_b(B_pad, D, itemsize, vmem_cap)
    if max_tile_b is not None:
        tile_b = min(tile_b, max(8, (int(max_tile_b) // 8) * 8))

    num_tiles = pl.cdiv(B_pad, tile_b)
    n_cores = 2 if num_tiles >= 2 else 1          # 2x on v7x, harmless on v5e/v6e
    tiles_per_core = pl.cdiv(num_tiles, n_cores)
    grid = (n_cores, tiles_per_core)

    def row_block_map(c, t):
        idx = c * tiles_per_core + t
        # Clamp so a trailing "empty" step never issues an out-of-bounds DMA;
        # its contribution is zeroed by the in-kernel mask.
        return (jnp.minimum(idx, num_tiles - 1), 0)

    kernel = functools.partial(
        _contrastive_loss_kernel,
        margin=float(margin), eps=float(eps),
        batch=B, tile_b=tile_b, tiles_per_core=int(tiles_per_core),
    )

    # Explicit VMEM limit sized from the actual footprint, capped below physical.
    footprint = (2 * 2 * tile_b * D * itemsize    # embedding streams, double-buffered
                 + 2 * tile_b * 128 * 4           # lane-padded label buffers
                 + 2 * tile_b * D * 4             # f32 working set
                 + (1 << 20))
    vmem_limit = int(min(vmem_cap * 0.9, max(2 * footprint, 32 << 20)))

    partials = pl.pallas_call(
        kernel,
        out_shape=jax.ShapeDtypeStruct((n_cores, 1, 1), jnp.float32),
        grid_spec=pltpu.PrefetchScalarGridSpec(
            num_scalar_prefetch=0,
            grid=grid,
            in_specs=[
                pl.BlockSpec((tile_b, D), row_block_map),
                pl.BlockSpec((tile_b, D), row_block_map),
                pl.BlockSpec((tile_b, 1), row_block_map),
            ],
            out_specs=pl.BlockSpec((1, 1, 1), lambda c, t: (c, 0, 0)),
            scratch_shapes=[pltpu.VMEM((1, 1), jnp.float32)],
        ),
        compiler_params=pltpu.CompilerParams(
            dimension_semantics=("parallel", "arbitrary"),
            vmem_limit_bytes=vmem_limit,
        ),
    )(output1, output2, label)

    # Combine per-core partials and apply the mean in the wrapper.
    return jnp.sum(partials) * (1.0 / B)


def _contrastive_loss_ref(o1, o2, lab, margin=2.0, eps=1e-6):
    o1 = o1.astype(jnp.float32)
    o2 = o2.astype(jnp.float32)
    lab = jnp.reshape(lab, (-1, 1)).astype(jnp.float32)
    d = jnp.sqrt(jnp.sum((o1 - o2 + eps) ** 2, axis=1, keepdims=True))
    return jnp.mean((1.0 - lab) * d ** 2
                    + lab * jnp.maximum(margin - d, 0.0) ** 2)


if __name__ == "__main__":
    key = jax.random.PRNGKey(0)
    margin = 2.0

    # (B, D, dtype, max_tile_b): exercises the plain path, the odd-batch
    # pad+mask path, the 2-core clamped-tile path, and the bf16 contract.
    cases = [
        (8, 32, jnp.float32, None),
        (13, 32, jnp.float32, 8),
        (40, 32, jnp.float32, 8),
        (16, 32, jnp.bfloat16, 8),
    ]

    for B, D, dtype, max_tile_b in cases:
        key, k1, k2, k3 = jax.random.split(key, 4)
        output1 = jax.random.normal(k1, (B, D), dtype=jnp.float32).astype(dtype)
        output2 = jax.random.normal(k2, (B, D), dtype=jnp.float32).astype(dtype)
        label = jax.random.bernoulli(k3, 0.5, (B, 1)).astype(jnp.float32)

        loss = contrastive_loss_pallas(output1, output2, label,
                                       margin=margin, max_tile_b=max_tile_b)
        loss = jax.block_until_ready(loss)

        ref = _contrastive_loss_ref(output1, output2, label, margin=margin)
        np.testing.assert_allclose(np.asarray(loss), np.asarray(ref),
                                   rtol=1e-5, atol=1e-6)
        assert loss.shape == ()

    print("KERNEL_OK")
</pallas_src>

<mosaic_0001>
module attributes {stable_mosaic.version = 11 : i64} {
  func.func @_contrastive_loss_kernel(%arg0: i32, %arg1: i32, %arg2: memref<8x32xf32, #tpu.memory_space<vmem>>, %arg3: memref<8x32xf32, #tpu.memory_space<vmem>>, %arg4: memref<8x1xf32, #tpu.memory_space<vmem>>, %arg5: memref<1x1x1xf32, #tpu.memory_space<vmem>>, %arg6: memref<1x1xf32, #tpu.memory_space<vmem>>) attributes {dimension_semantics = [#tpu.dimension_semantics<parallel>, #tpu.dimension_semantics<arbitrary>], iteration_bounds = array<i64: 1, 1>, scalar_prefetch = 0 : i64, scratch_operands = 1 : i64, tpu.core_type = #tpu.core_type<tc>, window_params = [{transform_indices = @transform_0, window_bounds = array<i64: 8, 32>}, {transform_indices = @transform_1, window_bounds = array<i64: 8, 32>}, {transform_indices = @transform_2, window_bounds = array<i64: 8, 1>}, {transform_indices = @transform_3, window_bounds = array<i64: 1, 1, 1>}]} {
    %c0_i32 = arith.constant 0 : i32
    %0 = arith.cmpi eq, %arg1, %c0_i32 : i32
    %1 = arith.extui %0 : i1 to i32
    %c0_i32_0 = arith.constant 0 : i32
    %2 = arith.cmpi ne, %1, %c0_i32_0 : i32
    scf.if %2 {
      %cst_19 = arith.constant 0.000000e+00 : f32
      %44 = vector.broadcast %cst_19 : f32 to vector<1x1xf32>
      %c0_20 = arith.constant 0 : index
      %c0_21 = arith.constant 0 : index
      %45 = vector.load %arg6[%c0_20, %c0_21] : memref<1x1xf32, #tpu.memory_space<vmem>>, vector<1x1xf32>
      tpu.vector_store %arg6[%c0_20, %c0_21], %44 {strides = array<i32>} : memref<1x1xf32, #tpu.memory_space<vmem>>, vector<1x1xf32>,
    } else {
    }
    %c0 = arith.constant 0 : index
    %c0_1 = arith.constant 0 : index
    %3 = vector.load %arg2[%c0, %c0_1] : memref<8x32xf32, #tpu.memory_space<vmem>>, vector<8x32xf32>
    %c0_2 = arith.constant 0 : index
    %c0_3 = arith.constant 0 : index
    %4 = vector.load %arg3[%c0_2, %c0_3] : memref<8x32xf32, #tpu.memory_space<vmem>>, vector<8x32xf32>
    %c0_4 = arith.constant 0 : index
    %c0_5 = arith.constant 0 : index
    %5 = vector.load %arg4[%c0_4, %c0_5] : memref<8x1xf32, #tpu.memory_space<vmem>>, vector<8x1xf32>
    %c1_i32 = arith.constant 1 : i32
    %6 = arith.muli %arg0, %c1_i32 : i32
    %7 = arith.addi %6, %arg1 : i32
    %c8_i32 = arith.constant 8 : i32
    %8 = arith.muli %7, %c8_i32 : i32
    %9 = tpu.iota {dimensions = array<i32: 0>} : vector<8x1xi32>
    %10 = vector.broadcast %8 : i32 to vector<8x1xi32>
    %11 = arith.addi %10, %9 : vector<8x1xi32>
    %c8_i32_6 = arith.constant 8 : i32
    %12 = vector.broadcast %c8_i32_6 : i32 to vector<8x1xi32>
    %13 = arith.cmpi slt, %11, %12 : vector<8x1xi32>
    %14 = arith.subf %3, %4 : vector<8x32xf32>
    %cst = arith.constant 9.99999997E-7 : f32
    %15 = vector.broadcast %cst : f32 to vector<8x32xf32>
    %16 = arith.addf %14, %15 : vector<8x32xf32>
    %17 = arith.mulf %16, %16 : vector<8x32xf32>
    %cst_7 = arith.constant dense<0.000000e+00> : vector<8xf32>
    %18 = vector.multi_reduction <add>, %17, %cst_7 [1] : vector<8x32xf32> to vector<8xf32>
    %19 = vector.shape_cast %18 : vector<8xf32> to vector<8x1xf32>
    %20 = math.sqrt %19 : vector<8x1xf32>
    %cst_8 = arith.constant 2.000000e+00 : f32
    %21 = vector.broadcast %cst_8 : f32 to vector<8x1xf32>
    %22 = arith.subf %21, %20 : vector<8x1xf32>
    %cst_9 = arith.constant 0.000000e+00 : f32
    %23 = vector.broadcast %cst_9 : f32 to vector<8x1xf32>
    %24 = arith.maximumf %22, %23 : vector<8x1xf32>
    %cst_10 = arith.constant 1.000000e+00 : f32
    %25 = vector.broadcast %cst_10 : f32 to vector<8x1xf32>
    %26 = arith.subf %25, %5 : vector<8x1xf32>
    %27 = arith.mulf %26, %19 : vector<8x1xf32>
    %28 = arith.mulf %24, %24 : vector<8x1xf32>
    %29 = arith.mulf %5, %28 : vector<8x1xf32>
    %30 = arith.addf %27, %29 : vector<8x1xf32>
    %cst_11 = arith.constant 0.000000e+00 : f32
    %31 = vector.broadcast %cst_11 : f32 to vector<8x1xf32>
    %32 = arith.select %13, %30, %31 : vector<8x1xi1>, vector<8x1xf32>
    %c0_12 = arith.constant 0 : index
    %c0_13 = arith.constant 0 : index
    %33 = vector.load %arg6[%c0_12, %c0_13] : memref<1x1xf32, #tpu.memory_space<vmem>>, vector<1x1xf32>
    %34 = vector.shape_cast %32 : vector<8x1xf32> to vector<1x8x1xf32>
    %cst_14 = arith.constant dense<0.000000e+00> : vector<1xf32>
    %35 = vector.multi_reduction <add>, %34, %cst_14 [1, 2] : vector<1x8x1xf32> to vector<1xf32>
    %36 = vector.shape_cast %35 : vector<1xf32> to vector<1x1x1xf32>
    %37 = vector.extract %36[0, 0, 0] : f32 from vector<1x1x1xf32>
    %38 = vector.broadcast %37 : f32 to vector<1x1xf32>
    %39 = arith.addf %33, %38 : vector<1x1xf32>
    %c0_15 = arith.constant 0 : index
    %c0_16 = arith.constant 0 : index
    %40 = vector.load %arg6[%c0_15, %c0_16] : memref<1x1xf32, #tpu.memory_space<vmem>>, vector<1x1xf32>
    tpu.vector_store %arg6[%c0_15, %c0_16], %39 {strides = array<i32>} : memref<1x1xf32, #tpu.memory_space<vmem>>, vector<1x1xf32>,
    %c0_i32_17 = arith.constant 0 : i32
    %41 = arith.cmpi eq, %arg1, %c0_i32_17 : i32
    %42 = arith.extui %41 : i1 to i32
    %c0_i32_18 = arith.constant 0 : i32
    %43 = arith.cmpi ne, %42, %c0_i32_18 : i32
    scf.if %43 {
      %c0_19 = arith.constant 0 : index
      %c0_20 = arith.constant 0 : index
      %44 = vector.load %arg6[%c0_19, %c0_20] : memref<1x1xf32, #tpu.memory_space<vmem>>, vector<1x1xf32>
      %c0_21 = arith.constant 0 : index
      %c0_22 = arith.constant 0 : index
      %c0_23 = arith.constant 0 : index
      %45 = vector.load %arg5[%c0_21, %c0_22, %c0_23] : memref<1x1x1xf32, #tpu.memory_space<vmem>>, vector<1x1x1xf32>
      %46 = vector.shape_cast %45 : vector<1x1x1xf32> to vector<1x1xf32>
      %47 = vector.shape_cast %44 : vector<1x1xf32> to vector<1x1x1xf32>
      tpu.vector_store %arg5[%c0_21, %c0_22, %c0_23], %47 {strides = array<i32>} : memref<1x1x1xf32, #tpu.memory_space<vmem>>, vector<1x1x1xf32>,
    } else {
    }
    return
  }
  func.func @transform_0(%arg0: i32, %arg1: i32) -> (i32, i32) {
    %c1_i32 = arith.constant 1 : i32
    %0 = arith.muli %arg0, %c1_i32 : i32
    %1 = arith.addi %0, %arg1 : i32
    %c0_i32 = arith.constant 0 : i32
    %2 = arith.minsi %1, %c0_i32 : i32
    %c0_i32_0 = arith.constant 0 : i32
    %c0_i32_1 = arith.constant 0 : i32
    return %2, %c0_i32_0 : i32, i32
  }
  func.func @transform_1(%arg0: i32, %arg1: i32) -> (i32, i32) {
    %c1_i32 = arith.constant 1 : i32
    %0 = arith.muli %arg0, %c1_i32 : i32
    %1 = arith.addi %0, %arg1 : i32
    %c0_i32 = arith.constant 0 : i32
    %2 = arith.minsi %1, %c0_i32 : i32
    %c0_i32_0 = arith.constant 0 : i32
    %c0_i32_1 = arith.constant 0 : i32
    return %2, %c0_i32_0 : i32, i32
  }
  func.func @transform_2(%arg0: i32, %arg1: i32) -> (i32, i32) {
    %c1_i32 = arith.constant 1 : i32
    %0 = arith.muli %arg0, %c1_i32 : i32
    %1 = arith.addi %0, %arg1 : i32
    %c0_i32 = arith.constant 0 : i32
    %2 = arith.minsi %1, %c0_i32 : i32
    %c0_i32_0 = arith.constant 0 : i32
    %c0_i32_1 = arith.constant 0 : i32
    return %2, %c0_i32_0 : i32, i32
  }
  func.func @transform_3(%arg0: i32, %arg1: i32) -> (i32, i32, i32) {
    %c0_i32 = arith.constant 0 : i32
    %c0_i32_0 = arith.constant 0 : i32
    %c0_i32_1 = arith.constant 0 : i32
    return %arg0, %c0_i32, %c0_i32_0 : i32, i32, i32
  }
}

</mosaic_0001>

<bundles_post_ra>
// kernel: tpu_custom_call.1
= control target key start
LH: loop header
LB: loop body
LE: loop exit
PB: predicated region body
PF: predicated region fallthrough
CT: control target
= control target key end

     0   :  { %8 = vsyncpa [#allocation4], 0  ;;  %s266_s0 = inlined_call_operand.vmem [shape: f32[8,32], index: 0, kind: input, shape index: {}]   ;;  %s267_s1 = inlined_call_operand.hbm [shape: f32[8,32], index: 1, kind: input, shape index: {}]   ;;  %s268_s2 = inlined_call_operand.vmem [shape: f32[8,1], index: 2, kind: input, shape index: {}]   ;;  %s269_s3 = inlined_call_operand.hbm [shape: f32[1,1,1], index: 3, kind: output, shape index: {}]  }
   0x1   :  { %9 = vsyncpa [#allocation5], 0  ;;  %s228_s12 = smov [#allocation3]  }
   0x2   :  { %s33_s13 = sshll.u32 %s228_s12, 4  ;;  %s34_s13 = int_to_ptr.vmem [resolvable:$true] %s33_s13 }
   0x3   :  { %s192_s14 = scalar_lea.vmem %s34_s13, 128  ;;  %p197_p1 = scmp.lt.s32.totalorder %s34_s13, %s34_s13 }
   0x4   :  { %p193_p0 = scmp.ne.s32.totalorder %s34_s13, %s192_s14  ;;  %p198_p2 = scmp.lt.s32.totalorder %s192_s14, %s192_s14 }
   0x6   :  { %p199_p3 = por %p198_p2, %p197_p1 }
   0x8   :  { %p200_p4 = pnand %p199_p3, %p193_p0 }
   0xa   :  { %203 = shalt.err (!%p200_p4)
}
   0xb   :  { %36 = dma.hbm_to_vmem [thread:$0]  %s267_s1, 128, %s34_s13, [#allocation4]  }
   0xc   :  { %224 = dma.done.wait [#allocation4], 128  }
   0xd   :  { %225 = vsyncadd [#allocation4], 4294967168  ;;  %v95_v0 = vld [vmem:[%s266_s0] sm:$0xff]  ;;  %vm108_vm0 = vcmask 261120   ;;  %vm128_vm3 = vcmask 7168   ;;  %vm93_vm4 = vcmask 0  }
   0xe   :  { %v96_v1 = vld [vmem:[#allocation3] sm:$0xff]  ;;  %v229_v21 = vmov 0.0  }
   0xf   :  { %v105_v2 = vsub.f32 %v95_v0, %v96_v1  ;;  %v97_v11 = vld [vmem:[%s268_s2] sm:$0xff]  ;;  %94 = vst.msk [vmem:[#allocation2] sm:$0x1] %vm93_vm4, %v229_v21  ;;  %s230_s2 = smov [#allocation6]  }
  0x10   :  { %v121_v15 = vsub.f32 1.0, %v97_v11  ;;  %s154_s20 = sshll.u32 %s230_s2, 4  ;;  %s155_s20 = int_to_ptr.vmem [resolvable:$true] %s154_s20 }
  0x11   :  { %v106_v3 = vadd.f32 1e-06, %v105_v2  ;;  %s204_s21 = scalar_lea.vmem %s155_s20, 16  ;;  %s208_s22 = scalar_lea.vmem %s155_s20, 32 }
  0x12   :  { %p205_p5 = scmp.ne.s32.totalorder %s155_s20, %s204_s21  ;;  %p209_p6 = scmp.lt.s32.totalorder %s155_s20, %s155_s20 }
  0x13   :  { %v107_v4 = vmul.f32 %v106_v3, %v106_v3  ;;  %p210_p7 = scmp.lt.s32.totalorder %s208_s22, %s204_s21 }
  0x15   :  { %v109_v5 = vsel %vm108_vm0, %v107_v4, 0.0  ;;  %p211_p8 = por %p210_p7, %p209_p6 }
  0x16   :  { %110 = vadd.xlane.f32.xlu0 %v109_v5  ;;  %v127_v29 = vld [vmem:[#allocation2] sm:$0x1] }
  0x17   :  { %p212_p9 = pnand %p211_p8, %p205_p5 }
  0x9f   :  { %v111_v6 = vpop.xlane.xlu0 %110 }
  0xa0   :  { %182 = vrsqrt.f32 %v111_v6  ;;  %vm114_vm1 = vcmp.eq.f32.partialorder %v111_v6, inf  ;;  %v117_v9 = vand.u32 2147483648, %v111_v6  ;;  %vm116_vm2 = vcmp.eq.f32.partialorder %v111_v6, 0.0 }
  0xa1   :  { %v122_v17 = vmul.f32 %v121_v15, %v111_v6 }
  0xad   :  { %v183_v7 = vpop.eup %182 }
  0xae   :  { %v113_v8 = vmul.f32 %v183_v7, %v111_v6 }
  0xb0   :  { %v115_v10 = vsel %vm114_vm1, %v111_v6, %v113_v8 }
  0xb1   :  { %v118_v12 = vsel %vm116_vm2, %v117_v9, %v115_v10 }
  0xb2   :  { %v119_v13 = vsub.f32 2.0, %v118_v12 }
  0xb4   :  { %v120_v14 = vmax.f32 %v119_v13, 0.0 }
  0xb6   :  { %v123_v16 = vmul.f32 %v120_v14, %v120_v14 }
  0xb8   :  { %v124_v18 = vmul.f32 %v123_v16, %v97_v11 }
  0xba   :  { %v125_v19 = vadd.f32 %v124_v18, %v122_v17 }
  0xbc   :  { %v129_v20 = vsel %vm128_vm3, %v125_v19, 0.0 }
  0xbd   :  { %130 = vadd.xlane.f32.xlu0 %v129_v20 }
 0x146   :  { %v131_v22 = vpop.xlane.xlu0 %130 }
 0x147   :  { %v132_v23 = vrot.slane %v131_v22, 4 }
 0x149   :  { %v133_v24 = vadd.f32 %v132_v23, %v131_v22 }
 0x14b   :  { %v134_v25 = vrot.slane %v133_v24, 2 }
 0x14d   :  { %v135_v26 = vadd.f32 %v134_v25, %v133_v24 }
 0x14f   :  { %v136_v27 = vrot.slane %v135_v26, 1 }
 0x151   :  { %v137_v28 = vadd.f32 %v136_v27, %v135_v26 }
 0x153   :  { %177 = vpush %v137_v28 }
 0x184   :  { %s178_s0 = spop %177 }
 0x185   :  { %v139_v30 = vstv %s178_s0 }
 0x186   :  { %v140_v31 = vadd.f32 %v139_v30, %v127_v29 }
 0x188   :  { %142 = vst.msk [vmem:[#allocation2] sm:$0x1] %vm93_vm4, %v140_v31 }
 0x18f   :  { %v146_v32 = vld [vmem:[#allocation2] sm:$0x1] }
 0x190   :  { %147 = vst.msk [vmem:[#allocation6] sm:$0x1] %vm93_vm4, %v146_v32 }
 0x191   :  { %215 = shalt.err (!%p212_p9)
}
 0x192   :  { %157 = dma.vmem_to_hbm [thread:$0]  %s155_s20, 16, %s269_s3, [#allocation5]  }
 0x193   :  { %226 = dma.done.wait [#allocation5], 16  }
 0x194   :  { %227 = vsyncadd [#allocation5], 4294967280 }
 0x195   :  { %161 = vsyncpa [#allocation4], 1 }
 0x196   :  { %162 = vsyncpa [#allocation5], 1 }

</bundles_post_ra>
